<compile_context>
chip_gen: v7x
topology: tpu7x:2x2x1
jax: 0.10.0
libtpu: 0.0.40
codegen_flags: <defaults>
</compile_context>

<pallas_src>
import functools

import jax
import jax.numpy as jnp
from jax.experimental import pallas as pl
from jax.experimental.pallas import tpu as pltpu

EPS = 1e-10
LANE = 128
SUBLANE = 8


def _l2norm2d_kernel(w_ref, x_ref, o_ref, *, approx):
    # w_ref: (C,) f32 per-channel scale in SMEM (scalar-prefetched once).
    # x_ref / o_ref: (1, C, T_S, 128) one (batch, spatial-tile) block in VMEM.
    n_ch = x_ref.shape[1]

    # Stream channel slabs: accumulate sum of squares without materializing
    # the whole (C, T_S, 128) block as an f32 value.
    x0 = x_ref[0, 0].astype(jnp.float32)                      # (T_S, 128)
    sumsq = x0 * x0
    for c in range(1, n_ch):
        xc = x_ref[0, c].astype(jnp.float32)
        sumsq = sumsq + xc * xc

    # 1 / (sqrt(sumsq) + eps) — eps added AFTER the sqrt (matches torch).
    inv = pl.reciprocal(jnp.sqrt(sumsq) + EPS, approx=approx)  # (T_S, 128)

    # Per-channel: (x / norm) * weight[c]; x is re-read per channel (cheap VMEM
    # loads) instead of caching a C x T_S x 128 f32 temp.
    # TODO(synk): for large C (>=64) switch to a lane-broadcast VMEM weight
    #             slab instead of unrolling per-channel SMEM scalars.
    for c in range(n_ch):
        xc = x_ref[0, c].astype(jnp.float32)
        o_ref[0, c] = ((xc * inv) * w_ref[c]).astype(o_ref.dtype)


def _plan(n_batch, n_channels, s_total, itemsize):
    """Pick (spatial tile rows, vmem_limit_bytes) from the actual hardware."""
    try:
        vmem_cap = int(pltpu.get_tpu_info().vmem_capacity_bytes)
    except Exception:  # interpret mode / older runtimes: assume 128 MiB part
        vmem_cap = 128 << 20
    # Scoped-VMEM request with headroom under physical capacity:
    #   v7x (64 MiB/TC) -> 32 MiB; v5e/v6e (128 MiB) -> 48 MiB.
    vmem_limit = (32 << 20) if vmem_cap <= (64 << 20) else (48 << 20)

    # Resident bytes per sublane row: double-buffered in + out blocks (4 total)
    # plus the two f32 (T_S, 128) temporaries (sumsq, inv) kept by the kernel.
    bytes_per_row = 4 * n_channels * LANE * itemsize + 2 * LANE * 4
    budget = vmem_limit - (6 << 20)                    # headroom for transients
    t_s = budget // max(bytes_per_row, 1)
    # 512-1024 rows already reaches ~85% of HBM roofline; cap so in-kernel
    # temporaries stay modest even for tiny C.
    t_s = int(min(t_s, 1024))
    t_s = max((t_s // SUBLANE) * SUBLANE, SUBLANE)

    if s_total < SUBLANE:
        return s_total, vmem_limit                     # single full-extent block
    if t_s > s_total:
        # Largest multiple-of-8 tile (full-vreg stores); a ragged tail is
        # boundary-masked by Pallas.
        t_s = s_total if s_total % SUBLANE == 0 else (s_total // SUBLANE) * SUBLANE

    # v7x megacore occupancy: keep >= 4 grid steps when the problem allows, so
    # both TensorCores get work even for N == 1 (no effect on v5e/v6e).
    n_tiles = -(-s_total // t_s)
    if n_batch * n_tiles < 4:
        want_tiles = min(-(-4 // n_batch), s_total // SUBLANE)
        if want_tiles > n_tiles:
            t_s = -(-s_total // want_tiles)
            t_s = max(-(-t_s // SUBLANE) * SUBLANE, SUBLANE)
    return t_s, vmem_limit


def l2norm2d(x_nchw, weight, *, approx_reciprocal=False):
    """x_nchw: (N, C, H, W); weight: (C,) -> (N, C, H, W)."""
    N, C, H, W = x_nchw.shape
    HW = H * W
    itemsize = jnp.dtype(x_nchw.dtype).itemsize

    # Pad only when HW is not lane-aligned, and then straight to a multiple of
    # 8*128 (full-vreg stores, same single pad pass). Never pad to the tile
    # size — ragged spatial tiles are handled by Pallas boundary masking.
    if HW % LANE == 0:
        hw_pad = HW
    else:
        hw_pad = -(-HW // (SUBLANE * LANE)) * (SUBLANE * LANE)
    s_total = hw_pad // LANE

    t_s, vmem_limit = _plan(N, C, s_total, itemsize)
    grid = (N, -(-s_total // t_s))

    x3 = x_nchw.reshape(N, C, HW)
    if hw_pad != HW:
        # TODO(synk): fold this pad (and the trailing slice) into the kernel
        #             with an in-kernel lane mask on the final block to avoid
        #             the extra HBM pass when HW % 128 != 0.
        x3 = jnp.pad(x3, ((0, 0), (0, 0), (0, hw_pad - HW)))
    x4 = x3.reshape(N, C, s_total, LANE)
    w1 = weight.reshape(C).astype(jnp.float32)

    kernel = functools.partial(_l2norm2d_kernel, approx=approx_reciprocal)

    out4 = pl.pallas_call(
        kernel,
        out_shape=jax.ShapeDtypeStruct((N, C, s_total, LANE), x_nchw.dtype),
        grid_spec=pltpu.PrefetchScalarGridSpec(
            num_scalar_prefetch=1,                      # weight -> SMEM, once
            grid=grid,
            in_specs=[
                pl.BlockSpec((1, C, t_s, LANE), lambda n, s, w: (n, 0, s, 0)),
            ],
            out_specs=pl.BlockSpec((1, C, t_s, LANE), lambda n, s, w: (n, 0, s, 0)),
        ),
        compiler_params=pltpu.CompilerParams(
            dimension_semantics=("parallel", "parallel"),
            vmem_limit_bytes=vmem_limit,
        ),
    )(w1, x4)

    out3 = out4.reshape(N, C, hw_pad)
    if hw_pad != HW:
        out3 = out3[:, :, :HW]
    return out3.reshape(N, C, H, W)


def l2norm2d_ref(x_nchw, weight):
    """Pure-JAX reference matching the PyTorch forward."""
    norm = jnp.sqrt(jnp.sum(x_nchw ** 2, axis=1, keepdims=True)) + EPS
    return weight[None, :, None, None] * (x_nchw / norm)


if __name__ == "__main__":
    # Module params (deterministic init, matching reset_parameters):
    #   n_channels = 4, scale (gamma) = 20.0 -> weight = full((4,), 20.0)
    n_channels = 4
    gamma = 20.0
    weight = jnp.full((n_channels,), gamma, dtype=jnp.float32)

    key = jax.random.PRNGKey(0)
    x = jax.random.normal(key, (2, n_channels, 16, 16), dtype=jnp.float32)

    out = l2norm2d(x, weight)
    out = jax.block_until_ready(out)

    ref = l2norm2d_ref(x, weight)
    assert out.shape == x.shape and out.dtype == x.dtype
    assert jnp.allclose(out, ref, atol=1e-5, rtol=1e-5), "mismatch vs reference"

    print("KERNEL_OK")
</pallas_src>

<mosaic_0001>
module attributes {stable_mosaic.version = 11 : i64} {
  func.func @_l2norm2d_kernel(%arg0: i32, %arg1: i32, %arg2: memref<4xf32, #tpu.memory_space<smem>>, %arg3: memref<1x4x2x128xf32, #tpu.memory_space<vmem>>, %arg4: memref<1x4x2x128xf32, #tpu.memory_space<vmem>>) attributes {dimension_semantics = [#tpu.dimension_semantics<parallel>, #tpu.dimension_semantics<parallel>], iteration_bounds = array<i64: 2, 1>, scalar_prefetch = 1 : i64, scratch_operands = 0 : i64, tpu.core_type = #tpu.core_type<tc>, window_params = [{transform_indices = @transform_0, window_bounds = array<i64: 1, 4, 2, 128>}, {transform_indices = @transform_1, window_bounds = array<i64: 1, 4, 2, 128>}]} {
    %c0 = arith.constant 0 : index
    %c0_0 = arith.constant 0 : index
    %c0_1 = arith.constant 0 : index
    %c0_2 = arith.constant 0 : index
    %0 = vector.load %arg3[%c0, %c0_0, %c0_1, %c0_2] : memref<1x4x2x128xf32, #tpu.memory_space<vmem>>, vector<1x1x2x128xf32>
    %1 = vector.shape_cast %0 : vector<1x1x2x128xf32> to vector<2x128xf32>
    %2 = arith.mulf %1, %1 : vector<2x128xf32>
    %c0_3 = arith.constant 0 : index
    %c1 = arith.constant 1 : index
    %c0_4 = arith.constant 0 : index
    %c0_5 = arith.constant 0 : index
    %3 = vector.load %arg3[%c0_3, %c1, %c0_4, %c0_5] : memref<1x4x2x128xf32, #tpu.memory_space<vmem>>, vector<1x1x2x128xf32>
    %4 = vector.shape_cast %3 : vector<1x1x2x128xf32> to vector<2x128xf32>
    %5 = arith.mulf %4, %4 : vector<2x128xf32>
    %6 = arith.addf %2, %5 : vector<2x128xf32>
    %c0_6 = arith.constant 0 : index
    %c2 = arith.constant 2 : index
    %c0_7 = arith.constant 0 : index
    %c0_8 = arith.constant 0 : index
    %7 = vector.load %arg3[%c0_6, %c2, %c0_7, %c0_8] : memref<1x4x2x128xf32, #tpu.memory_space<vmem>>, vector<1x1x2x128xf32>
    %8 = vector.shape_cast %7 : vector<1x1x2x128xf32> to vector<2x128xf32>
    %9 = arith.mulf %8, %8 : vector<2x128xf32>
    %10 = arith.addf %6, %9 : vector<2x128xf32>
    %c0_9 = arith.constant 0 : index
    %c3 = arith.constant 3 : index
    %c0_10 = arith.constant 0 : index
    %c0_11 = arith.constant 0 : index
    %11 = vector.load %arg3[%c0_9, %c3, %c0_10, %c0_11] : memref<1x4x2x128xf32, #tpu.memory_space<vmem>>, vector<1x1x2x128xf32>
    %12 = vector.shape_cast %11 : vector<1x1x2x128xf32> to vector<2x128xf32>
    %13 = arith.mulf %12, %12 : vector<2x128xf32>
    %14 = arith.addf %10, %13 : vector<2x128xf32>
    %15 = math.sqrt %14 : vector<2x128xf32>
    %cst = arith.constant 1.000000e-10 : f32
    %16 = vector.broadcast %cst : f32 to vector<2x128xf32>
    %17 = arith.addf %15, %16 : vector<2x128xf32>
    %18 = tpu.reciprocal %17 : vector<2x128xf32> -> vector<2x128xf32>
    %c0_12 = arith.constant 0 : index
    %c0_13 = arith.constant 0 : index
    %c0_14 = arith.constant 0 : index
    %c0_15 = arith.constant 0 : index
    %19 = vector.load %arg3[%c0_12, %c0_13, %c0_14, %c0_15] : memref<1x4x2x128xf32, #tpu.memory_space<vmem>>, vector<1x1x2x128xf32>
    %20 = vector.shape_cast %19 : vector<1x1x2x128xf32> to vector<2x128xf32>
    %21 = arith.mulf %20, %18 : vector<2x128xf32>
    %c0_16 = arith.constant 0 : index
    %22 = memref.load %arg2[%c0_16] : memref<4xf32, #tpu.memory_space<smem>>
    %23 = vector.broadcast %22 : f32 to vector<2x128xf32>
    %24 = arith.mulf %21, %23 : vector<2x128xf32>
    %c0_17 = arith.constant 0 : index
    %c0_18 = arith.constant 0 : index
    %c0_19 = arith.constant 0 : index
    %c0_20 = arith.constant 0 : index
    %25 = vector.load %arg4[%c0_17, %c0_18, %c0_19, %c0_20] : memref<1x4x2x128xf32, #tpu.memory_space<vmem>>, vector<1x1x2x128xf32>
    %26 = vector.shape_cast %25 : vector<1x1x2x128xf32> to vector<2x128xf32>
    %27 = vector.shape_cast %24 : vector<2x128xf32> to vector<1x1x2x128xf32>
    tpu.vector_store %arg4[%c0_17, %c0_18, %c0_19, %c0_20], %27 {strides = array<i32>} : memref<1x4x2x128xf32, #tpu.memory_space<vmem>>, vector<1x1x2x128xf32>,
    %c0_21 = arith.constant 0 : index
    %c1_22 = arith.constant 1 : index
    %c0_23 = arith.constant 0 : index
    %c0_24 = arith.constant 0 : index
    %28 = vector.load %arg3[%c0_21, %c1_22, %c0_23, %c0_24] : memref<1x4x2x128xf32, #tpu.memory_space<vmem>>, vector<1x1x2x128xf32>
    %29 = vector.shape_cast %28 : vector<1x1x2x128xf32> to vector<2x128xf32>
    %30 = arith.mulf %29, %18 : vector<2x128xf32>
    %c1_25 = arith.constant 1 : index
    %31 = memref.load %arg2[%c1_25] : memref<4xf32, #tpu.memory_space<smem>>
    %32 = vector.broadcast %31 : f32 to vector<2x128xf32>
    %33 = arith.mulf %30, %32 : vector<2x128xf32>
    %c0_26 = arith.constant 0 : index
    %c1_27 = arith.constant 1 : index
    %c0_28 = arith.constant 0 : index
    %c0_29 = arith.constant 0 : index
    %34 = vector.load %arg4[%c0_26, %c1_27, %c0_28, %c0_29] : memref<1x4x2x128xf32, #tpu.memory_space<vmem>>, vector<1x1x2x128xf32>
    %35 = vector.shape_cast %34 : vector<1x1x2x128xf32> to vector<2x128xf32>
    %36 = vector.shape_cast %33 : vector<2x128xf32> to vector<1x1x2x128xf32>
    tpu.vector_store %arg4[%c0_26, %c1_27, %c0_28, %c0_29], %36 {strides = array<i32>} : memref<1x4x2x128xf32, #tpu.memory_space<vmem>>, vector<1x1x2x128xf32>,
    %c0_30 = arith.constant 0 : index
    %c2_31 = arith.constant 2 : index
    %c0_32 = arith.constant 0 : index
    %c0_33 = arith.constant 0 : index
    %37 = vector.load %arg3[%c0_30, %c2_31, %c0_32, %c0_33] : memref<1x4x2x128xf32, #tpu.memory_space<vmem>>, vector<1x1x2x128xf32>
    %38 = vector.shape_cast %37 : vector<1x1x2x128xf32> to vector<2x128xf32>
    %39 = arith.mulf %38, %18 : vector<2x128xf32>
    %c2_34 = arith.constant 2 : index
    %40 = memref.load %arg2[%c2_34] : memref<4xf32, #tpu.memory_space<smem>>
    %41 = vector.broadcast %40 : f32 to vector<2x128xf32>
    %42 = arith.mulf %39, %41 : vector<2x128xf32>
    %c0_35 = arith.constant 0 : index
    %c2_36 = arith.constant 2 : index
    %c0_37 = arith.constant 0 : index
    %c0_38 = arith.constant 0 : index
    %43 = vector.load %arg4[%c0_35, %c2_36, %c0_37, %c0_38] : memref<1x4x2x128xf32, #tpu.memory_space<vmem>>, vector<1x1x2x128xf32>
    %44 = vector.shape_cast %43 : vector<1x1x2x128xf32> to vector<2x128xf32>
    %45 = vector.shape_cast %42 : vector<2x128xf32> to vector<1x1x2x128xf32>
    tpu.vector_store %arg4[%c0_35, %c2_36, %c0_37, %c0_38], %45 {strides = array<i32>} : memref<1x4x2x128xf32, #tpu.memory_space<vmem>>, vector<1x1x2x128xf32>,
    %c0_39 = arith.constant 0 : index
    %c3_40 = arith.constant 3 : index
    %c0_41 = arith.constant 0 : index
    %c0_42 = arith.constant 0 : index
    %46 = vector.load %arg3[%c0_39, %c3_40, %c0_41, %c0_42] : memref<1x4x2x128xf32, #tpu.memory_space<vmem>>, vector<1x1x2x128xf32>
    %47 = vector.shape_cast %46 : vector<1x1x2x128xf32> to vector<2x128xf32>
    %48 = arith.mulf %47, %18 : vector<2x128xf32>
    %c3_43 = arith.constant 3 : index
    %49 = memref.load %arg2[%c3_43] : memref<4xf32, #tpu.memory_space<smem>>
    %50 = vector.broadcast %49 : f32 to vector<2x128xf32>
    %51 = arith.mulf %48, %50 : vector<2x128xf32>
    %c0_44 = arith.constant 0 : index
    %c3_45 = arith.constant 3 : index
    %c0_46 = arith.constant 0 : index
    %c0_47 = arith.constant 0 : index
    %52 = vector.load %arg4[%c0_44, %c3_45, %c0_46, %c0_47] : memref<1x4x2x128xf32, #tpu.memory_space<vmem>>, vector<1x1x2x128xf32>
    %53 = vector.shape_cast %52 : vector<1x1x2x128xf32> to vector<2x128xf32>
    %54 = vector.shape_cast %51 : vector<2x128xf32> to vector<1x1x2x128xf32>
    tpu.vector_store %arg4[%c0_44, %c3_45, %c0_46, %c0_47], %54 {strides = array<i32>} : memref<1x4x2x128xf32, #tpu.memory_space<vmem>>, vector<1x1x2x128xf32>,
    return
  }
  func.func @transform_0(%arg0: i32, %arg1: i32, %arg2: memref<4xf32, #tpu.memory_space<smem>>) -> (i32, i32, i32, i32) {
    %c0_i32 = arith.constant 0 : i32
    %c0_i32_0 = arith.constant 0 : i32
    %c0_i32_1 = arith.constant 0 : i32
    return %arg0, %c0_i32, %arg1, %c0_i32_0 : i32, i32, i32, i32
  }
  func.func @transform_1(%arg0: i32, %arg1: i32, %arg2: memref<4xf32, #tpu.memory_space<smem>>) -> (i32, i32, i32, i32) {
    %c0_i32 = arith.constant 0 : i32
    %c0_i32_0 = arith.constant 0 : i32
    %c0_i32_1 = arith.constant 0 : i32
    return %arg0, %c0_i32, %arg1, %c0_i32_0 : i32, i32, i32, i32
  }
}

</mosaic_0001>

<bundles_post_ra>
// kernel: tpu_custom_call.1
= control target key start
LH: loop header
LB: loop body
LE: loop exit
PB: predicated region body
PF: predicated region fallthrough
CT: control target
= control target key end

     0   :  { %s745_s0 = inlined_call_operand.hbm [shape: f32[4], index: 0, kind: input, shape index: {}]   ;;  %s746_s1 = inlined_call_operand.hbm [shape: f32[2,4,2,128], index: 1, kind: input, shape index: {}]   ;;  %s747_s2 = inlined_call_operand.hbm [shape: f32[2,4,2,128], index: 2, kind: output, shape index: {}]  }
   0x1   :  { %s406_s11 = scalar_lea.hbm %s745_s0, 16 }
   0x2   :  { %p407_p0 = scmp.ne.s32.totalorder %s745_s0, %s406_s11  ;;  %p410_p1 = scmp.lt.u32.totalorder %s406_s11, %s745_s0 }
   0x4   :  { %p412_p2 = pnand %p410_p1, %p407_p0 }
   0x6   :  { %415 = shalt.err (!%p412_p2)  }
   0x7   :  { %s532_s16 = smov [#allocation3]  }
   0x8   :  { %8 = dma.hbm_to_smem %s745_s0, 16, %s532_s16, [#allocation2] }
   0x9   :  { %498 = dma.done.wait [#allocation2], 16 }
   0xa   :  { %499 = vsyncadd [#allocation2], 4294967280 }
   0xb   :  { %10 = sfence }
   0xc   :  { %11 = vsyncpa [#allocation5], 0 }
   0xd   :  { %13 = vsyncpa [#allocation5 + $0x1], 0 }
   0xe   :  { %14 = vsyncpa [#allocation6], 0 }
   0xf   :  { %16 = vsyncpa [#allocation6 + $0x1], 0  ;;  %s566_s19 = smov 0   ;;  %s568_s20 = smov 0  }
  0x10   :  { %s570_s21 = smov 0   ;;  %s572_s22 = smov 0  }
  0x11   :  { %s574_s23 = smov 0   ;;  %s576_s24 = smov 0  }
  0x12 LB: > { %s306_s0 = sadd.s32 4294967295, %s530_s24   ;;  %s307_s25 = sadd.s32 4294967294, %s530_s24   ;;  %s530_s24 = sphi %s576_s24, %s22_s24   ;;  %s526_s23 = sphi %s574_s23, %s762_s23   ;;  %s522_s22 = sphi %s572_s22, %s761_s22   ;;  %s518_s21 = sphi %s570_s21, %s760_s21   ;;  %s514_s20 = sphi %s568_s20, %s759_s20   ;;  %s510_s19 = sphi %s566_s19, %s758_s19  }
  0x13   : > { %s34_s26 = sadd.s32 1, %s526_s23  ;;  %s43_s27 = sadd.s32 1, %s518_s21 }
  0x14   : > { %p36_p3 = scmp.ge.s32.totalorder %s34_s26, 2  ;;  %p50_p4 = scmp.ne.s32.totalorder %s518_s21, %s514_s20 }
  0x15   : > { %p51_p5 = scmp.eq.s32.totalorder %s530_s24, 0  ;;  %p56_p6 = scmp.ne.s32.totalorder %s514_s20, %s510_s19 }
  0x16   : > { %s764_s26 = smov (%p36_p3, %s34_s26), 0  ;;  %p57_p8 = scmp.eq.s32.totalorder %s306_s0, 0 }
  0x17   : > { %p607_p7 = por %p51_p5, %p50_p4  ;;  %s38_s29 = ssub.s32 %s526_s23, %s764_s26 }
  0x18   : > { %p82_p9 = scmp.eq.s32.totalorder %s306_s0, 1  ;;  %p41_p10 = scmp.eq.s32.totalorder %s38_s29, 0 }
  0x19   : > { %p613_p11 = por %p57_p8, %p56_p6  ;;  %p88_p13 = scmp.eq.s32.totalorder %s307_s25, 1 }
  0x1a   : > { %p617_p12 = por %p82_p9, %p50_p4  ;;  %p347_p2 = scmp.lt.s32.totalorder %s530_s24, 2 }
  0x1b   : > { %s622_s4 = scalar_select %p41_p10, %s518_s21, %s43_s27  }
  0x1c   : > { %s751_s3 = scalar_select %p617_p12, 1, 0 }
  0x1d   : > { %p624_p0 = por %p88_p13, %p56_p6  ;;  %s108_s6 = sand.u32 1, %s518_s21  }
  0x1e   : > { %s310_s7 = sshll.u32 %s108_s6, 3  ;;  %s333_s8 = sshll.u32 %s526_s23, 7 }
  0x1f   : > { %s752_s5 = scalar_select %p624_p0, 1, 0 }
  0x20   : > { %s635_s11 = scalar_lea.hbm %s746_s1, %s333_s8  ;;  %s112_s12 = scalar_lea.vmem [#allocation4], %s310_s7 }
  0x21   : > { %s120_s13 = sshll.u32 %s112_s12, 4  ;;  %p641_p3 = pnand %p347_p2, %p607_p7  ;;  %s637_s13 = int_to_ptr.vmem [resolvable:$true] %s120_s13 }
  0x22   : > { %s646_s15 = scalar_lea.sflag [#allocation5], %s108_s6  ;;  %s416_s16 = scalar_lea.hbm %s635_s11, 128 }
  0x23   : > { %p417_p5 = scmp.ne.s32.totalorder %s635_s11, %s416_s16  ;;  %p418_p6 = pneg %p641_p3 }
  0x24   : > { %s421_s0 = scalar_lea.hbm %s746_s1, 256  ;;  %p422_p7 = scmp.lt.u32.totalorder %s635_s11, %s746_s1 }
  0x25   : > { %p419_p8 = pnand %p418_p6, %p417_p5  ;;  %p423_p10 = scmp.lt.u32.totalorder %s421_s0, %s416_s16 }
  0x26   : > { %p425_p2 = scmp.lt.u32.totalorder %s416_s16, %s635_s11 }
  0x27   : > { %p420_p9 = pneg %p419_p8  ;;  %p424_p13 = por %p423_p10, %p422_p7 }
  0x29   : > { %p426_p1 = por %p425_p2, %p424_p13 }
  0x2b   : > { %p427_p4 = pnand %p426_p1, %p420_p9 }
  0x2d   : > { %430 = shalt.err (!%p427_p4)
}
  0x2e   : > { %s431_s28 = scalar_lea.vmem %s637_s13, 128  ;;  %s533_s29 = smov [#allocation4]  }
  0x2f   : > { %p432_p5 = scmp.ne.s32.totalorder %s637_s13, %s431_s28  ;;  %s436_s6 = sshll.u32 %s533_s29, 4  ;;  %s437_s6 = int_to_ptr.vmem [resolvable:$false] %s436_s6 }
  0x30   : > { %s438_s7 = scalar_lea.vmem %s437_s6, 256  ;;  %p439_p12 = scmp.lt.s32.totalorder %s637_s13, %s437_s6 }
  0x31   : > { %p434_p8 = pnand %p432_p5, %p418_p6  ;;  %p440_p7 = scmp.lt.s32.totalorder %s438_s7, %s431_s28 }
  0x33   : > { %p435_p0 = pneg %p434_p8  ;;  %p441_p10 = por %p440_p7, %p439_p12 }
  0x35   : > { %p442_p13 = pnand %p441_p10, %p435_p0 }
  0x37   : > { %445 = shalt.err (!%p442_p13)
}
  0x38   : > { %s534_s8 = smov 32   ;;  %s535_s9 = smov 2  }
  0x39   : > { %342 = dma.hbm_to_vmem [thread:$0]  (!%p641_p3), %s635_s11, 128, %s637_s13, %s646_s15, %s534_s8, %s534_s8, %s535_s9  }
  0x3a   : > { %p128_p1 = scmp.lt.s32.totalorder %s530_s24, 3  ;;  %p754_p4 = scmp.ge.s32.totalorder %s530_s24, 1 }
  0x3c   : > { %p129_p6 = pnand %p754_p4, %p128_p1 }
  0x3d   : > { %s678_s10 = sand.u32 (!%p129_p6), 1, %s514_s20  }
  0x3e   : > { %132 = sbr.rel (%p129_p6) target bundleno = 127 (0x7f), region = 24  ;;  %s314_s12 = sshll.u32 (!%p129_p6), %s678_s10, 3 }
  0x3f   : > { %s135_s16 = scalar_lea.sflag (!%p129_p6), [#allocation5], %s678_s10  ;;  %s138_s17 = scalar_lea.vmem (!%p129_p6), [#allocation4], %s314_s12 }
  0x45   : > { %501 = dma.done.wait (%p613_p11), %s135_s16, 128  }
  0x46   : > { %503 = vsyncadd (%p613_p11), %s135_s16, 4294967168  ;;  %v157_v0 = vld [vmem:[%s138_s17] sm:$0x3]  ;;  %v316_v1 = vld [vmem:[%s138_s17 + $0x2] sm:$0x3]  ;;  %s181_s30 = sld [smem:[#allocation3]] }
  0x47   : > { %v317_v2 = vld [vmem:[%s138_s17 + $0x4] sm:$0x3]  ;;  %v158_v3 = vmul.f32 %v157_v0, %v157_v0  ;;  %v161_v4 = vmul.f32 %v316_v1, %v316_v1  ;;  %v318_v6 = vld [vmem:[%s138_s17 + $0x6] sm:$0x3]  ;;  %s320_s11 = sld [smem:[#allocation3 + $0x1]]  ;;  %s323_s13 = sld [smem:[#allocation3 + $0x2]] }
  0x48   : > { %v165_v5 = vmul.f32 %v317_v2, %v317_v2  ;;  %v169_v8 = vmul.f32 %v318_v6, %v318_v6  ;;  %s326_s14 = sld [smem:[#allocation3 + $0x3]]  ;;  %v319_v17 = vld [vmem:[%s138_s17 + $0x2] sm:$0x3]  ;;  %v322_v18 = vld [vmem:[%s138_s17 + $0x4] sm:$0x3]  ;;  %s156_s15 = scalar_lea.vmem [#allocation7], %s314_s12 }
  0x49   : > { %v162_v7 = vadd.f32 %v161_v4, %v158_v3  ;;  %v325_v19 = vld [vmem:[%s138_s17 + $0x6] sm:$0x3]  ;;  %s221_s18 = sshll.u32 %s156_s15, 4  ;;  %s334_s0 = sshll.u32 %s522_s22, 7  ;;  %s691_s18 = int_to_ptr.vmem [resolvable:$true] %s221_s18 }
  0x4a   : > { %s696_s28 = scalar_lea.hbm %s747_s2, %s334_s0  ;;  %s207_s22 = scalar_lea.sflag [#allocation6], %s678_s10 }
  0x4b   : > { %v166_v9 = vadd.f32 %v165_v5, %v162_v7  ;;  %s446_s29 = scalar_lea.vmem %s691_s18, 128  ;;  %p755_p12 = scmp.ne.s32.totalorder %s751_s3, 0 }
  0x4c   : > { %v182_v21 = vstv %s181_s30  ;;  %p447_p11 = scmp.ne.s32.totalorder %s691_s18, %s446_s29  ;;  %s536_s6 = smov [#allocation7]  }
  0x4d   : > { %v170_v10 = vadd.f32 %v169_v8, %v166_v9  ;;  %v188_v22 = vstv %s320_s11  ;;  %v195_v23 = vstv %s323_s13  ;;  %s450_s7 = sshll.u32 %s536_s6, 4  ;;  %s451_s7 = int_to_ptr.vmem [resolvable:$false] %s450_s7 }
  0x4e   : > { %v202_v24 = vstv %s326_s14  ;;  %p448_p0 = pnand %p447_p11, %p755_p12  ;;  %s452_s8 = scalar_lea.vmem %s451_s7, 256 }
  0x4f   : > { %402 = vrsqrt.f32 %v170_v10  ;;  %vm173_vm0 = vcmp.eq.f32.partialorder %v170_v10, inf  ;;  %v176_v12 = vand.u32 2147483648, %v170_v10  ;;  %vm175_vm1 = vcmp.eq.f32.partialorder %v170_v10, 0.0  ;;  %p453_p9 = scmp.lt.s32.totalorder %s691_s18, %s451_s7  ;;  %p454_p2 = scmp.lt.s32.totalorder %s452_s8, %s446_s29 }
  0x50   : > { %p449_p3 = pneg %p448_p0 }
  0x51   : > { %p455_p5 = por %p454_p2, %p453_p9 }
  0x53   : > { %p456_p8 = pnand %p455_p5, %p449_p3 }
  0x59   : > { %v403_v11 = vpop.eup %402 }
  0x5a   : > { %v172_v13 = vmul.f32 %v403_v11, %v170_v10 }
  0x5c   : > { %v174_v14 = vsel %vm173_vm0, %v170_v10, %v172_v13 }
  0x5d   : > { %v177_v15 = vsel %vm175_vm1, %v176_v12, %v174_v14 }
  0x5e   : > { %v178_v16 = vadd.f32 1e-10, %v177_v15 }
  0x60   : > { %404 = vrcp.f32 %v178_v16 }
  0x6a   : > { %v405_v20 = vpop.eup %404 }
  0x6b   : > { %v180_v25 = vmul.f32 %v405_v20, %v157_v0  ;;  %v186_v26 = vmul.f32 %v405_v20, %v319_v17  ;;  %v193_v27 = vmul.f32 %v405_v20, %v322_v18  ;;  %v200_v28 = vmul.f32 %v405_v20, %v325_v19 }
  0x6d   : > { %v183_v29 = vmul.f32 %v182_v21, %v180_v25  ;;  %v189_v30 = vmul.f32 %v188_v22, %v186_v26  ;;  %v196_v31 = vmul.f32 %v195_v23, %v193_v27  ;;  %v203_v32 = vmul.f32 %v202_v24, %v200_v28 }
  0x6f   : > { %184 = vst [vmem:[%s156_s15] sm:$0x3] %v183_v29  ;;  %321 = vst [vmem:[%s156_s15 + $0x2] sm:$0x3] %v189_v30 }
  0x70   : > { %324 = vst [vmem:[%s156_s15 + $0x4] sm:$0x3] %v196_v31  ;;  %327 = vst [vmem:[%s156_s15 + $0x6] sm:$0x3] %v203_v32 }
  0x71   : > { %459 = shalt.err (!%p456_p8)
}
  0x72   : > { %s460_s9 = scalar_lea.hbm %s696_s28, 128  ;;  %s464_s17 = scalar_lea.hbm %s747_s2, 256 }
  0x73   : > { %p461_p7 = scmp.ne.s32.totalorder %s696_s28, %s460_s9  ;;  %p465_p1 = scmp.lt.u32.totalorder %s696_s28, %s747_s2 }
  0x74   : > { %p466_p4 = scmp.lt.u32.totalorder %s464_s17, %s460_s9  ;;  %p468_p11 = scmp.lt.u32.totalorder %s460_s9, %s696_s28 }
  0x75   : > { %p462_p10 = pnand %p461_p7, %p755_p12 }
  0x76   : > { %p467_p6 = por %p466_p4, %p465_p1 }
  0x77   : > { %p463_p13 = pneg %p462_p10 }
  0x78   : > { %p469_p0 = por %p468_p11, %p467_p6 }
  0x7a   : > { %p470_p3 = pnand %p469_p0, %p463_p13 }
  0x7c   : > { %473 = shalt.err (!%p470_p3)
}
  0x7d   : > { %s537_s13 = smov 32   ;;  %s538_s14 = smov 2  }
  0x7e   : > { %337 = dma.vmem_to_hbm [thread:$0]  (%p755_p12), %s691_s18, 128, %s696_s28, %s207_s22, %s537_s13, %s537_s13, %s538_s14  }
  0x7f PF: > { %s236_s15 = sand.u32 1, %s510_s19   ;;  %p756_p9 = scmp.ne.s32.totalorder %s752_s5, 0 }
  0x80   : > { %p757_p2 = scmp.ge.s32.totalorder %s530_s24, 2  ;;  %s237_s0 = scalar_lea.sflag [#allocation6], %s236_s15 }
  0x82   : > { %p344_p5 = pnand %p757_p2, %p756_p9 }
  0x84   : > { %505 = dma.done.wait (!%p344_p5), %s237_s0, 128  }
  0x85   : > { %507 = vsyncadd (!%p344_p5), %s237_s0, 4294967168  ;;  %s22_s24 = sadd.s32 1, %s530_s24   ;;  %s758_s19 = smov %s514_s20 }
  0x86   : > { %p19_p8 = scmp.ge.s32.totalorder %s22_s24, 4   ;;  %s759_s20 = smov %s518_s21 }
  0x87   : > { %s760_s21 = smov %s622_s4  ;;  %s761_s22 = smov %s526_s23 }
  0x88   : > { %s762_s23 = smov %s764_s26  ;;  %21 = sbr.rel (!%p19_p8) target bundleno = 18 (0x12), region = 75 }
  0x8f   :  { %242 = vsyncpa [#allocation5], 1 }
  0x90   :  { %244 = vsyncpa [#allocation5 + $0x1], 1 }
  0x91   :  { %245 = vsyncpa [#allocation6], 1 }
  0x92   :  { %247 = vsyncpa [#allocation6 + $0x1], 1 }

</bundles_post_ra>
